<compile_context>
chip_gen: v7x
topology: tpu7x:2x2x1
jax: 0.10.0
libtpu: 0.0.40
codegen_flags: <defaults>
</compile_context>

<pallas_src>
import functools

import jax
import jax.numpy as jnp
from jax.experimental import pallas as pl
from jax.experimental.pallas import tpu as pltpu


LANE = 128
ROW_TILE = 256  # big enough to amortize per-grid-step overhead, tiny vs. VMEM

_COMPILER_PARAMS = pltpu.CompilerParams(
    dimension_semantics=("parallel",),          # row tiles are independent (megacore on v7x)
    vmem_limit_bytes=48 * 1024 * 1024,          # explicit; safe under v7x's 64 MiB physical VMEM
)


def _round_up(x, m):
    return ((x + m - 1) // m) * m


# ----------------------------- Pallas kernels -----------------------------

def xw_kernel(x_ref, w_ref, o_ref):
    # XW1 = X_tile @ W1   (feature transform, hoisted out of the aggregation kernels)
    o_ref[...] = jnp.dot(
        x_ref[...], w_ref[...], preferred_element_type=jnp.float32
    ).astype(o_ref.dtype)


def layer1_kernel(a_ref, xw1_ref, b1_ref, w2_ref, o_ref):
    # H_tile   = relu(A_row_tile @ XW1 + b1)
    # HW2_tile = H_tile @ W2      (layer-2 transform fused in; H never hits HBM)
    agg = jnp.dot(a_ref[...], xw1_ref[...], preferred_element_type=jnp.float32)
    h = jnp.maximum(agg + b1_ref[...], 0.0)
    # TODO(synk): F.dropout(training=True) would need in-kernel pltpu.prng_* masking;
    # eval-mode semantics (identity) are implemented here.
    o_ref[...] = jnp.dot(
        h.astype(w2_ref.dtype), w2_ref[...], preferred_element_type=jnp.float32
    ).astype(o_ref.dtype)


def layer2_kernel(a_ref, hw2_ref, b2_ref, o_ref, *, num_classes):
    # logits = A_row_tile @ HW2 + b2 ; out = log_softmax over the real class columns
    logits = jnp.dot(a_ref[...], hw2_ref[...], preferred_element_type=jnp.float32)
    logits = logits + b2_ref[...]
    col = jax.lax.broadcasted_iota(jnp.int32, logits.shape, 1)
    logits = jnp.where(col < num_classes, logits, jnp.float32(-1e30))  # mask padded classes
    m = jnp.max(logits, axis=-1, keepdims=True)
    shifted = logits - m
    lse = jnp.log(jnp.sum(jnp.exp(shifted), axis=-1, keepdims=True))
    o_ref[...] = shifted - lse


# --------------------------- pallas_call wrappers ---------------------------

def _gcn_xw(x, w, tm):
    n, f_in = x.shape
    f_out = w.shape[1]
    return pl.pallas_call(
        xw_kernel,
        out_shape=jax.ShapeDtypeStruct((n, f_out), jnp.bfloat16),
        grid_spec=pltpu.PrefetchScalarGridSpec(
            num_scalar_prefetch=0,
            grid=(n // tm,),
            in_specs=[
                pl.BlockSpec((tm, f_in), lambda i: (i, 0)),      # X row slab (streamed)
                pl.BlockSpec((f_in, f_out), lambda i: (0, 0)),   # W1, resident
            ],
            out_specs=pl.BlockSpec((tm, f_out), lambda i: (i, 0)),
        ),
        compiler_params=_COMPILER_PARAMS,
    )(x, w)


def _gcn_layer1(a_hat, xw1, b1, w2, tm):
    n = a_hat.shape[0]
    h_pad = xw1.shape[1]
    c_pad = w2.shape[1]
    return pl.pallas_call(
        layer1_kernel,
        out_shape=jax.ShapeDtypeStruct((n, c_pad), jnp.bfloat16),
        grid_spec=pltpu.PrefetchScalarGridSpec(
            num_scalar_prefetch=0,
            grid=(n // tm,),
            in_specs=[
                pl.BlockSpec((tm, n), lambda i: (i, 0)),         # A_hat row slab (streamed)
                pl.BlockSpec((n, h_pad), lambda i: (0, 0)),      # XW1, resident
                pl.BlockSpec((1, h_pad), lambda i: (0, 0)),      # b1
                pl.BlockSpec((h_pad, c_pad), lambda i: (0, 0)),  # W2, resident
            ],
            out_specs=pl.BlockSpec((tm, c_pad), lambda i: (i, 0)),
        ),
        compiler_params=_COMPILER_PARAMS,
    )(a_hat, xw1, b1, w2)


def _gcn_layer2(a_hat, hw2, b2, tm, num_classes):
    n = a_hat.shape[0]
    c_pad = hw2.shape[1]
    return pl.pallas_call(
        functools.partial(layer2_kernel, num_classes=num_classes),
        out_shape=jax.ShapeDtypeStruct((n, c_pad), jnp.float32),
        grid_spec=pltpu.PrefetchScalarGridSpec(
            num_scalar_prefetch=0,
            grid=(n // tm,),
            in_specs=[
                pl.BlockSpec((tm, n), lambda i: (i, 0)),        # A_hat row slab (streamed)
                pl.BlockSpec((n, c_pad), lambda i: (0, 0)),     # HW2, resident
                pl.BlockSpec((1, c_pad), lambda i: (0, 0)),     # b2
            ],
            out_specs=pl.BlockSpec((tm, c_pad), lambda i: (i, 0)),
        ),
        compiler_params=_COMPILER_PARAMS,
    )(a_hat, hw2, b2)


# ------------------------------- JAX glue ---------------------------------

def normalized_adjacency(edge_index, num_nodes):
    """Dense A_hat = D^{-1/2} (A + I) D^{-1/2} from a [2, E] edge_index.

    Precomputed once outside the jitted forward (depends only on edge_index).
    Diagonal is forced to exactly 1 (matches PyG's add_remaining_self_loops).
    """
    src, dst = edge_index[0], edge_index[1]
    a = jnp.zeros((num_nodes, num_nodes), jnp.float32)
    a = a.at[src, dst].set(1.0)
    a = jnp.maximum(a, a.T)                               # symmetrize (undirected graph)
    eye = jnp.eye(num_nodes, dtype=jnp.float32)
    a = a * (1.0 - eye) + eye                             # self-loop weight exactly 1
    deg = jnp.sum(a, axis=1)
    d_inv_sqrt = jnp.where(deg > 0, jax.lax.rsqrt(deg), 0.0)
    return a * d_inv_sqrt[:, None] * d_inv_sqrt[None, :]


def net_forward(x, a_hat, params):
    n, f_in = x.shape
    hidden = params["w1"].shape[1]
    num_classes = params["w2"].shape[1]

    # Pad N to a lane multiple so A_hat slabs load lane-dense, then pick the row tile
    # and re-pad so the grid divides evenly. 2x(TM x N_pad) bf16 double-buffered A_hat
    # slabs stay far below v7x's 64 MiB VMEM even for Cora-sized graphs.
    n_lane = _round_up(n, LANE)
    tm = min(ROW_TILE, n_lane)
    n_pad = _round_up(n_lane, tm)
    f_in_pad = _round_up(f_in, LANE)
    h_pad = _round_up(hidden, LANE)
    c_pad = _round_up(num_classes, LANE)

    # Zero-pad to lane-dense shapes; bf16 MXU inputs, f32 accumulation in-kernel.
    xp = jnp.zeros((n_pad, f_in_pad), jnp.bfloat16).at[:n, :f_in].set(
        x.astype(jnp.bfloat16))
    ap = jnp.zeros((n_pad, n_pad), jnp.bfloat16).at[:n, :n].set(
        a_hat.astype(jnp.bfloat16))
    w1p = jnp.zeros((f_in_pad, h_pad), jnp.bfloat16).at[:f_in, :hidden].set(
        params["w1"].astype(jnp.bfloat16))
    b1p = jnp.zeros((1, h_pad), jnp.float32).at[:, :hidden].set(params["b1"])
    w2p = jnp.zeros((h_pad, c_pad), jnp.bfloat16).at[:hidden, :num_classes].set(
        params["w2"].astype(jnp.bfloat16))
    b2p = jnp.zeros((1, c_pad), jnp.float32).at[:, :num_classes].set(params["b2"])

    xw1 = _gcn_xw(xp, w1p, tm)                           # [n_pad, h_pad]  bf16
    hw2 = _gcn_layer1(ap, xw1, b1p, w2p, tm)             # [n_pad, c_pad]  bf16
    out_p = _gcn_layer2(ap, hw2, b2p, tm, num_classes)   # [n_pad, c_pad]  f32 log-probs

    return out_p[:n, :num_classes]


# --------------------------------- main ------------------------------------

if __name__ == "__main__":
    N_NODES = 32       # number of graph nodes
    N_FEATURES = 16    # dataset.num_node_features (small synthetic value)
    HIDDEN = 16        # GCNConv hidden dim from the module
    N_CLASSES = 8      # dataset.num_classes (small synthetic value)
    N_EDGES = 64

    key = jax.random.PRNGKey(0)
    k_x, k_e, k_w1, k_w2 = jax.random.split(key, 4)

    x = jax.random.normal(k_x, (N_NODES, N_FEATURES), dtype=jnp.float32)
    edge_index = jax.random.randint(k_e, (2, N_EDGES), 0, N_NODES, dtype=jnp.int32)

    # Deterministic glorot-style init; GCNConv biases init to zero.
    def glorot(k, shape):
        limit = jnp.sqrt(6.0 / (shape[0] + shape[1]))
        return jax.random.uniform(k, shape, jnp.float32, -limit, limit)

    params = {
        "w1": glorot(k_w1, (N_FEATURES, HIDDEN)),
        "b1": jnp.zeros((1, HIDDEN), jnp.float32),
        "w2": glorot(k_w2, (HIDDEN, N_CLASSES)),
        "b2": jnp.zeros((1, N_CLASSES), jnp.float32),
    }

    # A_hat depends only on edge_index -> built once, off the jitted hot path.
    a_hat = normalized_adjacency(edge_index, N_NODES)
    a_hat = jax.block_until_ready(a_hat)

    out = jax.jit(net_forward)(x, a_hat, params)
    jax.block_until_ready(out)

    assert out.shape == (N_NODES, N_CLASSES)
    # log_softmax rows should exponentiate-sum to ~1
    assert jnp.allclose(jnp.sum(jnp.exp(out), axis=1), 1.0, atol=1e-4)

    print("KERNEL_OK")
</pallas_src>

<mosaic_0001>
module attributes {stable_mosaic.version = 11 : i64} {
  func.func @xw_kernel(%arg0: i32, %arg1: memref<128x128xbf16, #tpu.memory_space<vmem>>, %arg2: memref<128x128xbf16, #tpu.memory_space<vmem>>, %arg3: memref<128x128xbf16, #tpu.memory_space<vmem>>) attributes {dimension_semantics = [#tpu.dimension_semantics<parallel>], iteration_bounds = array<i64: 1>, scalar_prefetch = 0 : i64, scratch_operands = 0 : i64, tpu.core_type = #tpu.core_type<tc>, window_params = [{transform_indices = @transform_0, window_bounds = array<i64: 128, 128>}, {pipeline_mode = #tpu.pipeline_mode<synchronous>, transform_indices = @transform_1, window_bounds = array<i64: 128, 128>}, {transform_indices = @transform_2, window_bounds = array<i64: 128, 128>}]} {
    %c0 = arith.constant 0 : index
    %c0_0 = arith.constant 0 : index
    %0 = vector.load %arg1[%c0, %c0_0] : memref<128x128xbf16, #tpu.memory_space<vmem>>, vector<128x128xbf16>
    %c0_1 = arith.constant 0 : index
    %c0_2 = arith.constant 0 : index
    %1 = vector.load %arg2[%c0_1, %c0_2] : memref<128x128xbf16, #tpu.memory_space<vmem>>, vector<128x128xbf16>
    %cst = arith.constant dense<0.000000e+00> : vector<128x128xf32>
    %2 = tpu.matmul %0, %1, %cst {dimension_numbers = #tpu.dot_dimension_numbers<[1], [0], [0], [1], [0, 0, 1, 1], [], []>} : vector<128x128xbf16>, vector<128x128xbf16>, vector<128x128xf32> -> vector<128x128xf32>
    %3 = arith.truncf %2 : vector<128x128xf32> to vector<128x128xbf16>
    %c0_3 = arith.constant 0 : index
    %c0_4 = arith.constant 0 : index
    %4 = vector.load %arg3[%c0_3, %c0_4] : memref<128x128xbf16, #tpu.memory_space<vmem>>, vector<128x128xbf16>
    tpu.vector_store %arg3[%c0_3, %c0_4], %3 {strides = array<i32>} : memref<128x128xbf16, #tpu.memory_space<vmem>>, vector<128x128xbf16>,
    return
  }
  func.func @transform_0(%arg0: i32) -> (i32, i32) {
    %c0_i32 = arith.constant 0 : i32
    %c0_i32_0 = arith.constant 0 : i32
    return %arg0, %c0_i32 : i32, i32
  }
  func.func @transform_1(%arg0: i32) -> (i32, i32) {
    %c0_i32 = arith.constant 0 : i32
    %c0_i32_0 = arith.constant 0 : i32
    %c0_i32_1 = arith.constant 0 : i32
    return %c0_i32, %c0_i32_0 : i32, i32
  }
  func.func @transform_2(%arg0: i32) -> (i32, i32) {
    %c0_i32 = arith.constant 0 : i32
    %c0_i32_0 = arith.constant 0 : i32
    return %arg0, %c0_i32 : i32, i32
  }
}

module attributes {stable_mosaic.version = 11 : i64} {
  func.func @layer1_kernel(%arg0: i32, %arg1: memref<128x128xbf16, #tpu.memory_space<vmem>>, %arg2: memref<128x128xbf16, #tpu.memory_space<vmem>>, %arg3: memref<1x128xf32, #tpu.memory_space<vmem>>, %arg4: memref<128x128xbf16, #tpu.memory_space<vmem>>, %arg5: memref<128x128xbf16, #tpu.memory_space<vmem>>) attributes {dimension_semantics = [#tpu.dimension_semantics<parallel>], iteration_bounds = array<i64: 1>, scalar_prefetch = 0 : i64, scratch_operands = 0 : i64, tpu.core_type = #tpu.core_type<tc>, window_params = [{transform_indices = @transform_0, window_bounds = array<i64: 128, 128>}, {pipeline_mode = #tpu.pipeline_mode<synchronous>, transform_indices = @transform_1, window_bounds = array<i64: 128, 128>}, {pipeline_mode = #tpu.pipeline_mode<synchronous>, transform_indices = @transform_2, window_bounds = array<i64: 1, 128>}, {pipeline_mode = #tpu.pipeline_mode<synchronous>, transform_indices = @transform_3, window_bounds = array<i64: 128, 128>}, {transform_indices = @transform_4, window_bounds = array<i64: 128, 128>}]} {
    %c0 = arith.constant 0 : index
    %c0_0 = arith.constant 0 : index
    %0 = vector.load %arg1[%c0, %c0_0] : memref<128x128xbf16, #tpu.memory_space<vmem>>, vector<128x128xbf16>
    %c0_1 = arith.constant 0 : index
    %c0_2 = arith.constant 0 : index
    %1 = vector.load %arg2[%c0_1, %c0_2] : memref<128x128xbf16, #tpu.memory_space<vmem>>, vector<128x128xbf16>
    %cst = arith.constant dense<0.000000e+00> : vector<128x128xf32>
    %2 = tpu.matmul %0, %1, %cst {dimension_numbers = #tpu.dot_dimension_numbers<[1], [0], [0], [1], [0, 0, 1, 1], [], []>} : vector<128x128xbf16>, vector<128x128xbf16>, vector<128x128xf32> -> vector<128x128xf32>
    %c0_3 = arith.constant 0 : index
    %c0_4 = arith.constant 0 : index
    %3 = vector.load %arg3[%c0_3, %c0_4] : memref<1x128xf32, #tpu.memory_space<vmem>>, vector<1x128xf32>
    %4 = vector.broadcast %3 : vector<1x128xf32> to vector<128x128xf32>
    %5 = arith.addf %2, %4 : vector<128x128xf32>
    %cst_5 = arith.constant 0.000000e+00 : f32
    %6 = vector.broadcast %cst_5 : f32 to vector<128x128xf32>
    %7 = arith.maximumf %5, %6 : vector<128x128xf32>
    %8 = arith.truncf %7 : vector<128x128xf32> to vector<128x128xbf16>
    %c0_6 = arith.constant 0 : index
    %c0_7 = arith.constant 0 : index
    %9 = vector.load %arg4[%c0_6, %c0_7] : memref<128x128xbf16, #tpu.memory_space<vmem>>, vector<128x128xbf16>
    %cst_8 = arith.constant dense<0.000000e+00> : vector<128x128xf32>
    %10 = tpu.matmul %8, %9, %cst_8 {dimension_numbers = #tpu.dot_dimension_numbers<[1], [0], [0], [1], [0, 0, 1, 1], [], []>} : vector<128x128xbf16>, vector<128x128xbf16>, vector<128x128xf32> -> vector<128x128xf32>
    %11 = arith.truncf %10 : vector<128x128xf32> to vector<128x128xbf16>
    %c0_9 = arith.constant 0 : index
    %c0_10 = arith.constant 0 : index
    %12 = vector.load %arg5[%c0_9, %c0_10] : memref<128x128xbf16, #tpu.memory_space<vmem>>, vector<128x128xbf16>
    tpu.vector_store %arg5[%c0_9, %c0_10], %11 {strides = array<i32>} : memref<128x128xbf16, #tpu.memory_space<vmem>>, vector<128x128xbf16>,
    return
  }
  func.func @transform_0(%arg0: i32) -> (i32, i32) {
    %c0_i32 = arith.constant 0 : i32
    %c0_i32_0 = arith.constant 0 : i32
    return %arg0, %c0_i32 : i32, i32
  }
  func.func @transform_1(%arg0: i32) -> (i32, i32) {
    %c0_i32 = arith.constant 0 : i32
    %c0_i32_0 = arith.constant 0 : i32
    %c0_i32_1 = arith.constant 0 : i32
    return %c0_i32, %c0_i32_0 : i32, i32
  }
  func.func @transform_2(%arg0: i32) -> (i32, i32) {
    %c0_i32 = arith.constant 0 : i32
    %c0_i32_0 = arith.constant 0 : i32
    %c0_i32_1 = arith.constant 0 : i32
    return %c0_i32, %c0_i32_0 : i32, i32
  }
  func.func @transform_3(%arg0: i32) -> (i32, i32) {
    %c0_i32 = arith.constant 0 : i32
    %c0_i32_0 = arith.constant 0 : i32
    %c0_i32_1 = arith.constant 0 : i32
    return %c0_i32, %c0_i32_0 : i32, i32
  }
  func.func @transform_4(%arg0: i32) -> (i32, i32) {
    %c0_i32 = arith.constant 0 : i32
    %c0_i32_0 = arith.constant 0 : i32
    return %arg0, %c0_i32 : i32, i32
  }
}

module attributes {stable_mosaic.version = 11 : i64} {
  func.func @layer2_kernel(%arg0: i32, %arg1: memref<128x128xbf16, #tpu.memory_space<vmem>>, %arg2: memref<128x128xbf16, #tpu.memory_space<vmem>>, %arg3: memref<1x128xf32, #tpu.memory_space<vmem>>, %arg4: memref<128x128xf32, #tpu.memory_space<vmem>>) attributes {dimension_semantics = [#tpu.dimension_semantics<parallel>], iteration_bounds = array<i64: 1>, scalar_prefetch = 0 : i64, scratch_operands = 0 : i64, tpu.core_type = #tpu.core_type<tc>, window_params = [{transform_indices = @transform_0, window_bounds = array<i64: 128, 128>}, {pipeline_mode = #tpu.pipeline_mode<synchronous>, transform_indices = @transform_1, window_bounds = array<i64: 128, 128>}, {pipeline_mode = #tpu.pipeline_mode<synchronous>, transform_indices = @transform_2, window_bounds = array<i64: 1, 128>}, {transform_indices = @transform_3, window_bounds = array<i64: 128, 128>}]} {
    %c0 = arith.constant 0 : index
    %c0_0 = arith.constant 0 : index
    %0 = vector.load %arg1[%c0, %c0_0] : memref<128x128xbf16, #tpu.memory_space<vmem>>, vector<128x128xbf16>
    %c0_1 = arith.constant 0 : index
    %c0_2 = arith.constant 0 : index
    %1 = vector.load %arg2[%c0_1, %c0_2] : memref<128x128xbf16, #tpu.memory_space<vmem>>, vector<128x128xbf16>
    %cst = arith.constant dense<0.000000e+00> : vector<128x128xf32>
    %2 = tpu.matmul %0, %1, %cst {dimension_numbers = #tpu.dot_dimension_numbers<[1], [0], [0], [1], [0, 0, 1, 1], [], []>} : vector<128x128xbf16>, vector<128x128xbf16>, vector<128x128xf32> -> vector<128x128xf32>
    %c0_3 = arith.constant 0 : index
    %c0_4 = arith.constant 0 : index
    %3 = vector.load %arg3[%c0_3, %c0_4] : memref<1x128xf32, #tpu.memory_space<vmem>>, vector<1x128xf32>
    %4 = vector.broadcast %3 : vector<1x128xf32> to vector<128x128xf32>
    %5 = arith.addf %2, %4 : vector<128x128xf32>
    %6 = tpu.iota {dimensions = array<i32: 1>} : vector<128x128xi32>
    %c8_i32 = arith.constant 8 : i32
    %7 = vector.broadcast %c8_i32 : i32 to vector<128x128xi32>
    %8 = arith.cmpi slt, %6, %7 : vector<128x128xi32>
    %cst_5 = arith.constant -1.000000e+30 : f32
    %9 = vector.broadcast %cst_5 : f32 to vector<128x128xf32>
    %10 = arith.select %8, %5, %9 : vector<128x128xi1>, vector<128x128xf32>
    %cst_6 = arith.constant dense<0xFF800000> : vector<128xf32>
    %11 = vector.multi_reduction <maximumf>, %10, %cst_6 [1] : vector<128x128xf32> to vector<128xf32>
    %12 = vector.shape_cast %11 : vector<128xf32> to vector<128x1xf32>
    %13 = vector.broadcast %12 : vector<128x1xf32> to vector<128x128xf32>
    %14 = arith.subf %10, %13 : vector<128x128xf32>
    %15 = math.exp %14 : vector<128x128xf32>
    %cst_7 = arith.constant dense<0.000000e+00> : vector<128xf32>
    %16 = vector.multi_reduction <add>, %15, %cst_7 [1] : vector<128x128xf32> to vector<128xf32>
    %17 = vector.shape_cast %16 : vector<128xf32> to vector<128x1xf32>
    %18 = math.log %17 : vector<128x1xf32>
    %19 = vector.broadcast %18 : vector<128x1xf32> to vector<128x128xf32>
    %20 = arith.subf %14, %19 : vector<128x128xf32>
    %c0_8 = arith.constant 0 : index
    %c0_9 = arith.constant 0 : index
    %21 = vector.load %arg4[%c0_8, %c0_9] : memref<128x128xf32, #tpu.memory_space<vmem>>, vector<128x128xf32>
    tpu.vector_store %arg4[%c0_8, %c0_9], %20 {strides = array<i32>} : memref<128x128xf32, #tpu.memory_space<vmem>>, vector<128x128xf32>,
    return
  }
  func.func @transform_0(%arg0: i32) -> (i32, i32) {
    %c0_i32 = arith.constant 0 : i32
    %c0_i32_0 = arith.constant 0 : i32
    return %arg0, %c0_i32 : i32, i32
  }
  func.func @transform_1(%arg0: i32) -> (i32, i32) {
    %c0_i32 = arith.constant 0 : i32
    %c0_i32_0 = arith.constant 0 : i32
    %c0_i32_1 = arith.constant 0 : i32
    return %c0_i32, %c0_i32_0 : i32, i32
  }
  func.func @transform_2(%arg0: i32) -> (i32, i32) {
    %c0_i32 = arith.constant 0 : i32
    %c0_i32_0 = arith.constant 0 : i32
    %c0_i32_1 = arith.constant 0 : i32
    return %c0_i32, %c0_i32_0 : i32, i32
  }
  func.func @transform_3(%arg0: i32) -> (i32, i32) {
    %c0_i32 = arith.constant 0 : i32
    %c0_i32_0 = arith.constant 0 : i32
    return %arg0, %c0_i32 : i32, i32
  }
}

</mosaic_0001>

<bundles_post_ra>
// kernel: net_forward.3
= control target key start
LH: loop header
LB: loop body
LE: loop exit
PB: predicated region body
PF: predicated region fallthrough
CT: control target
= control target key end

     0   :  { %s583_s1 = inlined_call_operand.vmem [shape: bf16[128,128], index: 1, kind: input, shape index: {}]   ;;  %s584_s0 = inlined_call_operand.vmem [shape: bf16[128,128], index: 0, kind: input, shape index: {}]   ;;  %s585_s2 = inlined_call_operand.vmem [shape: bf16[128,128], index: 2, kind: output, shape index: {}]  }
   0x1   :  { %v480_v0 = vld [vmem:[%s583_s1] sm:$0xff]   ;;  %v481_v1 = vld [vmem:[%s583_s1 + $0x8] sm:$0xff]   ;;  %v482_v2 = vld [vmem:[%s583_s1 + $0x10] sm:$0xff]  }
   0x2   :  { %432 = vmatprep.subr.bf16.mxu0 %v480_v0  ;;  %464 = vmatprep.subr.bf16.mxu1 %v480_v0  ;;  %v483_v3 = vld [vmem:[%s583_s1 + $0x18] sm:$0xff]   ;;  %v488_v4 = vld [vmem:[%s584_s0] sm:$0xff]   ;;  %v485_v7 = vld [vmem:[%s583_s1 + $0x28] sm:$0xff]  }
   0x3   :  { %433 = vmatpush3.bf16.msra.mxu0 %v480_v0  ;;  %472 = vmatpush3.bf16.msra.mxu1 %v480_v0  ;;  %v489_v5 = vld [vmem:[%s584_s0 + $0x20] sm:$0xff]   ;;  %v486_v8 = vld [vmem:[%s583_s1 + $0x30] sm:$0xff]   ;;  %v487_v9 = vld [vmem:[%s583_s1 + $0x38] sm:$0xff]  }
   0x4   :  { %434 = vmatprep.subr.bf16.mxu0 %v481_v1  ;;  %465 = vmatprep.subr.bf16.mxu1 %v481_v1  ;;  %v484_v6 = vld [vmem:[%s583_s1 + $0x20] sm:$0xff]   ;;  %v490_v10 = vld [vmem:[%s584_s0 + $0x8] sm:$0xff]   ;;  %v492_v12 = vld [vmem:[%s584_s0 + $0x10] sm:$0xff]  }
   0x5   :  { %448 = vmatprep.mubr.bf16.mxu0 %v488_v4  ;;  %456 = vmatprep.mubr.bf16.mxu1 %v489_v5  ;;  %v491_v11 = vld [vmem:[%s584_s0 + $0x28] sm:$0xff]   ;;  %v493_v13 = vld [vmem:[%s584_s0 + $0x30] sm:$0xff]   ;;  %v494_v14 = vld [vmem:[%s584_s0 + $0x18] sm:$0xff]  }
   0x6   :  { %v495_v15 = vld [vmem:[%s584_s0 + $0x38] sm:$0xff]  }
   0x7   :  { %435 = vmatpush3.bf16.msra.mxu0 %v481_v1  ;;  %473 = vmatpush3.bf16.msra.mxu1 %v481_v1 }
   0x8   :  { %436 = vmatprep.subr.bf16.mxu0 %v482_v2  ;;  %466 = vmatprep.subr.bf16.mxu1 %v482_v2 }
   0xb   :  { %437 = vmatpush3.bf16.msra.mxu0 %v482_v2  ;;  %474 = vmatpush3.bf16.msra.mxu1 %v482_v2 }
   0xc   :  { %438 = vmatprep.subr.bf16.mxu0 %v483_v3  ;;  %467 = vmatprep.subr.bf16.mxu1 %v483_v3 }
   0xf   :  { %439 = vmatpush3.bf16.msra.mxu0 %v483_v3  ;;  %475 = vmatpush3.bf16.msra.mxu1 %v483_v3 }
  0x10   :  { %440 = vmatprep.subr.bf16.mxu0 %v484_v6  ;;  %468 = vmatprep.subr.bf16.mxu1 %v484_v6 }
  0x13   :  { %441 = vmatpush3.bf16.msra.mxu0 %v484_v6  ;;  %476 = vmatpush3.bf16.msra.mxu1 %v484_v6 }
  0x14   :  { %442 = vmatprep.subr.bf16.mxu0 %v485_v7  ;;  %469 = vmatprep.subr.bf16.mxu1 %v485_v7 }
  0x17   :  { %443 = vmatpush3.bf16.msra.mxu0 %v485_v7  ;;  %477 = vmatpush3.bf16.msra.mxu1 %v485_v7 }
  0x18   :  { %444 = vmatprep.subr.bf16.mxu0 %v486_v8  ;;  %470 = vmatprep.subr.bf16.mxu1 %v486_v8 }
  0x1b   :  { %445 = vmatpush3.bf16.msra.mxu0 %v486_v8  ;;  %478 = vmatpush3.bf16.msra.mxu1 %v486_v8 }
  0x1c   :  { %446 = vmatprep.subr.bf16.mxu0 %v487_v9  ;;  %471 = vmatprep.subr.bf16.mxu1 %v487_v9 }
  0x1f   :  { %447 = vmatpush3.bf16.msra.mxu0 %v487_v9  ;;  %479 = vmatpush3.bf16.msra.mxu1 %v487_v9 }
  0x22   :  { %449 = vmatmul.mubr.bf16.vlgmr.msra.gmra.mrb[0].mxu0 %v490_v10  ;;  %457 = vmatmul.mubr.bf16.vlgmr.msra.gmra.mrb[0].mxu1 %v491_v11 }
  0x23   :  { %452 = vmatprep.mubr.bf16.mxu0 %v492_v12  ;;  %460 = vmatprep.mubr.bf16.mxu1 %v493_v13 }
  0x2a   :  { %453 = vmatmul.mubr.bf16.gmra.mrb[4].mxu0 %v494_v14  ;;  %461 = vmatmul.mubr.bf16.gmra.mrb[4].mxu1 %v495_v15 }
  0xf5   :  { %v450_v16 = vpop.f32.mrb[0].mxu0  ;;  %v458_v17 = vpop.f32.mrb[0].mxu1 }
  0xf6   :  { %v174_v18 = vpop.f32.mrb[1].mxu0  ;;  %v206_v19 = vpop.f32.mrb[1].mxu1 }
  0xf7   :  { %v451_v20 = vpop.f32.mrb[2].mxu0  ;;  %v459_v21 = vpop.f32.mrb[2].mxu1 }
  0xf8   :  { %v377_v22 = vpack.c.bf16 %v451_v20, %v450_v16  ;;  %v397_v23 = vpack.c.bf16 %v459_v21, %v458_v17  ;;  %v177_v24 = vpop.f32.mrb[3].mxu0  ;;  %v209_v25 = vpop.f32.mrb[3].mxu1 }
  0xf9   :  { %v372_v26 = vpack.c.bf16 %v177_v24, %v174_v18  ;;  %v392_v27 = vpack.c.bf16 %v209_v25, %v206_v19 }
  0xfa   :  { %409 = vst [vmem:[%s585_s2 + $0x8] sm:$0xff] %v377_v22   ;;  %413 = vst [vmem:[%s585_s2 + $0x28] sm:$0xff] %v397_v23  }
  0xfb   :  { %373 = vst [vmem:[%s585_s2] sm:$0xff] %v372_v26   ;;  %412 = vst [vmem:[%s585_s2 + $0x20] sm:$0xff] %v392_v27  }
  0xfd   :  { %v454_v28 = vpop.f32.mrb[4].mxu0  ;;  %v462_v29 = vpop.f32.mrb[4].mxu1 }
  0xfe   :  { %v190_v30 = vpop.f32.mrb[5].mxu0  ;;  %v222_v31 = vpop.f32.mrb[5].mxu1 }
  0xff   :  { %v455_v32 = vpop.f32.mrb[6].mxu0  ;;  %v463_v33 = vpop.f32.mrb[6].mxu1 }
 0x100   :  { %v387_v34 = vpack.c.bf16 %v455_v32, %v454_v28  ;;  %v407_v35 = vpack.c.bf16 %v463_v33, %v462_v29  ;;  %v193_v36 = vpop.f32.mrb[7].mxu0  ;;  %v225_v37 = vpop.f32.mrb[7].mxu1 }
 0x101   :  { %v382_v38 = vpack.c.bf16 %v193_v36, %v190_v30  ;;  %v402_v39 = vpack.c.bf16 %v225_v37, %v222_v31 }
 0x102   :  { %411 = vst [vmem:[%s585_s2 + $0x18] sm:$0xff] %v387_v34   ;;  %415 = vst [vmem:[%s585_s2 + $0x38] sm:$0xff] %v407_v35  }
 0x103   :  { %410 = vst [vmem:[%s585_s2 + $0x10] sm:$0xff] %v382_v38   ;;  %414 = vst [vmem:[%s585_s2 + $0x30] sm:$0xff] %v402_v39  }

// kernel: net_forward.4
= control target key start
LH: loop header
LB: loop body
LE: loop exit
PB: predicated region body
PF: predicated region fallthrough
CT: control target
= control target key end

     0   :  { %s867_s1 = inlined_call_operand.vmem [shape: bf16[128,128], index: 1, kind: input, shape index: {}]   ;;  %s868_s0 = inlined_call_operand.vmem [shape: bf16[128,128], index: 0, kind: input, shape index: {}]   ;;  %s869_s3 = inlined_call_operand.vmem [shape: bf16[128,128], index: 3, kind: input, shape index: {}]   ;;  %s870_s2 = inlined_call_operand.vmem [shape: f32[1,128], index: 2, kind: input, shape index: {}]   ;;  %s871_s4 = inlined_call_operand.vmem [shape: bf16[128,128], index: 4, kind: output, shape index: {}]  }
   0x1   :  { %v719_v0 = vld [vmem:[%s867_s1] sm:$0xff]   ;;  %v720_v1 = vld [vmem:[%s867_s1 + $0x8] sm:$0xff]   ;;  %v721_v2 = vld [vmem:[%s867_s1 + $0x10] sm:$0xff]  }
   0x2   :  { %655 = vmatprep.subr.bf16.mxu0 %v719_v0  ;;  %v722_v3 = vld [vmem:[%s867_s1 + $0x18] sm:$0xff]   ;;  %v727_v4 = vld [vmem:[%s868_s0] sm:$0xff]   ;;  %v724_v6 = vld [vmem:[%s867_s1 + $0x28] sm:$0xff]  }
   0x3   :  { %656 = vmatpush3.bf16.msra.mxu0 %v719_v0  ;;  %671 = vmatprep.mubr.bf16.mxu0 %v727_v4  ;;  %v723_v5 = vld [vmem:[%s867_s1 + $0x20] sm:$0xff]   ;;  %v736_v8 = vld [vmem:[%s869_s3 + $0x8] sm:$0xff]   ;;  %v725_v9 = vld [vmem:[%s867_s1 + $0x30] sm:$0xff]  }
   0x4   :  { %657 = vmatprep.subr.bf16.mxu0 %v720_v1  ;;  %v735_v7 = vld [vmem:[%s869_s3] sm:$0xff]   ;;  %v737_v10 = vld [vmem:[%s869_s3 + $0x10] sm:$0xff]   ;;  %v726_v11 = vld [vmem:[%s867_s1 + $0x38] sm:$0xff]  }
   0x5   :  { %687 = vmatprep.subr.bf16.mxu1 %v735_v7  ;;  %v738_v12 = vld [vmem:[%s869_s3 + $0x18] sm:$0xff]   ;;  %v739_v13 = vld [vmem:[%s869_s3 + $0x20] sm:$0xff]   ;;  %v728_v14 = vld [vmem:[%s868_s0 + $0x8] sm:$0xff]  }
   0x6   :  { %688 = vmatpush3.bf16.msra.mxu1 %v735_v7  ;;  %v729_v15 = vld [vmem:[%s868_s0 + $0x10] sm:$0xff]   ;;  %v740_v16 = vld [vmem:[%s869_s3 + $0x28] sm:$0xff]   ;;  %v730_v17 = vld [vmem:[%s868_s0 + $0x18] sm:$0xff]  }
   0x7   :  { %658 = vmatpush3.bf16.msra.mxu0 %v720_v1  ;;  %689 = vmatprep.subr.bf16.mxu1 %v736_v8  ;;  %v731_v18 = vld [vmem:[%s868_s0 + $0x20] sm:$0xff]   ;;  %v732_v19 = vld [vmem:[%s868_s0 + $0x28] sm:$0xff]   ;;  %v733_v20 = vld [vmem:[%s868_s0 + $0x30] sm:$0xff]  }
   0x8   :  { %659 = vmatprep.subr.bf16.mxu0 %v721_v2  ;;  %v734_v21 = vld [vmem:[%s868_s0 + $0x38] sm:$0xff]   ;;  %v741_v22 = vld [vmem:[%s869_s3 + $0x30] sm:$0xff]   ;;  %v519_v24 = vld [vmem:[%s870_s2] ss:$0 sm:$0xff] }
   0x9   :  { %v742_v23 = vld [vmem:[%s869_s3 + $0x38] sm:$0xff]  }
   0xa   :  { %690 = vmatpush3.bf16.msra.mxu1 %v736_v8 }
   0xb   :  { %660 = vmatpush3.bf16.msra.mxu0 %v721_v2  ;;  %691 = vmatprep.subr.bf16.mxu1 %v737_v10 }
   0xc   :  { %661 = vmatprep.subr.bf16.mxu0 %v722_v3 }
   0xe   :  { %692 = vmatpush3.bf16.msra.mxu1 %v737_v10 }
   0xf   :  { %662 = vmatpush3.bf16.msra.mxu0 %v722_v3  ;;  %693 = vmatprep.subr.bf16.mxu1 %v738_v12 }
  0x10   :  { %663 = vmatprep.subr.bf16.mxu0 %v723_v5 }
  0x12   :  { %694 = vmatpush3.bf16.msra.mxu1 %v738_v12 }
  0x13   :  { %664 = vmatpush3.bf16.msra.mxu0 %v723_v5  ;;  %695 = vmatprep.subr.bf16.mxu1 %v739_v13 }
  0x14   :  { %665 = vmatprep.subr.bf16.mxu0 %v724_v6 }
  0x16   :  { %696 = vmatpush3.bf16.msra.mxu1 %v739_v13 }
  0x17   :  { %666 = vmatpush3.bf16.msra.mxu0 %v724_v6  ;;  %697 = vmatprep.subr.bf16.mxu1 %v740_v16 }
  0x18   :  { %667 = vmatprep.subr.bf16.mxu0 %v725_v9 }
  0x1a   :  { %698 = vmatpush3.bf16.msra.mxu1 %v740_v16 }
  0x1b   :  { %668 = vmatpush3.bf16.msra.mxu0 %v725_v9  ;;  %699 = vmatprep.subr.bf16.mxu1 %v741_v22 }
  0x1c   :  { %669 = vmatprep.subr.bf16.mxu0 %v726_v11 }
  0x1e   :  { %700 = vmatpush3.bf16.msra.mxu1 %v741_v22 }
  0x1f   :  { %670 = vmatpush3.bf16.msra.mxu0 %v726_v11  ;;  %701 = vmatprep.subr.bf16.mxu1 %v742_v23 }
  0x22   :  { %672 = vmatmul.mubr.bf16.vlgmr.msra.gmra.mrb[0].mxu0 %v728_v14  ;;  %702 = vmatpush3.bf16.msra.mxu1 %v742_v23 }
  0x23   :  { %675 = vmatprep.mubr.bf16.mxu0 %v729_v15 }
  0x2a   :  { %676 = vmatmul.mubr.bf16.gmra.mrb[4].mxu0 %v730_v17 }
  0x2b   :  { %679 = vmatprep.mubr.bf16.mxu0 %v731_v18 }
  0x32   :  { %680 = vmatmul.mubr.bf16.gmra.mrb[8].mxu0 %v732_v19 }
  0x33   :  { %683 = vmatprep.mubr.bf16.mxu0 %v733_v20 }
  0x3a   :  { %684 = vmatmul.mubr.bf16.gmra.mrb[12].mxu0 %v734_v21 }
  0xf5   :  { %v673_v25 = vpop.f32.mrb[0].mxu0 }
  0xf6   :  { %v196_v26 = vadd.f32 %v673_v25, %v519_v24  ;;  %v187_v27 = vpop.f32.mrb[1].mxu0 }
  0xf7   :  { %v188_v28 = vadd.f32 %v519_v24, %v187_v27  ;;  %v674_v29 = vpop.f32.mrb[2].mxu0 }
  0xf8   :  { %v199_v30 = vadd.f32 %v674_v29, %v519_v24  ;;  %v190_v31 = vpop.f32.mrb[3].mxu0  ;;  %v252_v33 = vmax.f32 %v196_v26, 0.0 }
  0xf9   :  { %v191_v32 = vadd.f32 %v519_v24, %v190_v31  ;;  %v250_v35 = vmax.f32 %v188_v28, 0.0 }
  0xfa   :  { %v253_v34 = vmax.f32 %v199_v30, 0.0 }
  0xfb   :  { %v251_v36 = vmax.f32 %v191_v32, 0.0 }
  0xfc   :  { %v267_v37 = vpack.c.bf16 %v253_v34, %v252_v33 }
  0xfd   :  { %v677_v38 = vpop.f32.mrb[4].mxu0  ;;  %v266_v39 = vpack.c.bf16 %v251_v36, %v250_v35 }
  0xfe   :  { %v212_v40 = vadd.f32 %v677_v38, %v519_v24  ;;  %v203_v41 = vpop.f32.mrb[5].mxu0 }
  0xff   :  { %v204_v42 = vadd.f32 %v519_v24, %v203_v41  ;;  %v678_v43 = vpop.f32.mrb[6].mxu0  ;;  %703 = vmatprep.mubr.bf16.mxu1 %v266_v39 }
 0x100   :  { %v215_v44 = vadd.f32 %v678_v43, %v519_v24  ;;  %v206_v45 = vpop.f32.mrb[7].mxu0  ;;  %704 = vmatmul.mubr.bf16.vlgmr.msra.gmra.mrb[0].mxu1 %v267_v37  ;;  %v256_v47 = vmax.f32 %v212_v40, 0.0 }
 0x101   :  { %v207_v46 = vadd.f32 %v519_v24, %v206_v45  ;;  %v254_v49 = vmax.f32 %v204_v42, 0.0 }
 0x102   :  { %v257_v48 = vmax.f32 %v215_v44, 0.0 }
 0x103   :  { %v255_v50 = vmax.f32 %v207_v46, 0.0 }
 0x104   :  { %v269_v51 = vpack.c.bf16 %v257_v48, %v256_v47 }
 0x105   :  { %v268_v52 = vpack.c.bf16 %v255_v50, %v254_v49  ;;  %v681_v53 = vpop.f32.mrb[8].mxu0 }
 0x106   :  { %v228_v54 = vadd.f32 %v681_v53, %v519_v24  ;;  %v219_v55 = vpop.f32.mrb[9].mxu0 }
 0x107   :  { %v220_v56 = vadd.f32 %v519_v24, %v219_v55  ;;  %v682_v57 = vpop.f32.mrb[10].mxu0  ;;  %707 = vmatprep.mubr.bf16.mxu1 %v268_v52 }
 0x108   :  { %v231_v58 = vadd.f32 %v682_v57, %v519_v24  ;;  %v222_v59 = vpop.f32.mrb[11].mxu0  ;;  %708 = vmatmul.mubr.bf16.gmra.mrb[4].mxu1 %v269_v51  ;;  %v260_v61 = vmax.f32 %v228_v54, 0.0 }
 0x109   :  { %v223_v60 = vadd.f32 %v519_v24, %v222_v59  ;;  %v258_v63 = vmax.f32 %v220_v56, 0.0 }
 0x10a   :  { %v261_v62 = vmax.f32 %v231_v58, 0.0 }
 0x10b   :  { %v259_v0 = vmax.f32 %v223_v60, 0.0 }
 0x10c   :  { %v271_v1 = vpack.c.bf16 %v261_v62, %v260_v61 }
 0x10d   :  { %v270_v2 = vpack.c.bf16 %v259_v0, %v258_v63  ;;  %v685_v3 = vpop.f32.mrb[12].mxu0 }
 0x10e   :  { %v244_v4 = vadd.f32 %v685_v3, %v519_v24  ;;  %v235_v5 = vpop.f32.mrb[13].mxu0 }
 0x10f   :  { %v236_v6 = vadd.f32 %v519_v24, %v235_v5  ;;  %v686_v7 = vpop.f32.mrb[14].mxu0  ;;  %711 = vmatprep.mubr.bf16.mxu1 %v270_v2 }
 0x110   :  { %v247_v8 = vadd.f32 %v686_v7, %v519_v24  ;;  %v238_v9 = vpop.f32.mrb[15].mxu0  ;;  %712 = vmatmul.mubr.bf16.gmra.mrb[8].mxu1 %v271_v1  ;;  %v264_v11 = vmax.f32 %v244_v4, 0.0 }
 0x111   :  { %v239_v10 = vadd.f32 %v519_v24, %v238_v9  ;;  %v262_v13 = vmax.f32 %v236_v6, 0.0 }
 0x112   :  { %v265_v12 = vmax.f32 %v247_v8, 0.0 }
 0x113   :  { %v263_v14 = vmax.f32 %v239_v10, 0.0 }
 0x114   :  { %v273_v15 = vpack.c.bf16 %v265_v12, %v264_v11 }
 0x115   :  { %v272_v16 = vpack.c.bf16 %v263_v14, %v262_v13 }
 0x117   :  { %715 = vmatprep.mubr.bf16.mxu1 %v272_v16 }
 0x118   :  { %716 = vmatmul.mubr.bf16.gmra.mrb[12].mxu1 %v273_v15 }
 0x1d3   :  { %v705_v17 = vpop.f32.mrb[0].mxu1 }
 0x1d4   :  { %v372_v18 = vpop.f32.mrb[1].mxu1 }
 0x1d5   :  { %v706_v19 = vpop.f32.mrb[2].mxu1 }
 0x1d6   :  { %v584_v20 = vpack.c.bf16 %v706_v19, %v705_v17  ;;  %v375_v21 = vpop.f32.mrb[3].mxu1 }
 0x1d7   :  { %v579_v22 = vpack.c.bf16 %v375_v21, %v372_v18 }
 0x1d8   :  { %616 = vst [vmem:[%s871_s4 + $0x8] sm:$0xff] %v584_v20  }
 0x1d9   :  { %580 = vst [vmem:[%s871_s4] sm:$0xff] %v579_v22  }
 0x1db   :  { %v709_v23 = vpop.f32.mrb[4].mxu1 }
 0x1dc   :  { %v388_v24 = vpop.f32.mrb[5].mxu1 }
 0x1dd   :  { %v710_v25 = vpop.f32.mrb[6].mxu1 }
 0x1de   :  { %v594_v26 = vpack.c.bf16 %v710_v25, %v709_v23  ;;  %v391_v27 = vpop.f32.mrb[7].mxu1 }
 0x1df   :  { %v589_v28 = vpack.c.bf16 %v391_v27, %v388_v24 }
 0x1e0   :  { %618 = vst [vmem:[%s871_s4 + $0x18] sm:$0xff] %v594_v26  }
 0x1e1   :  { %617 = vst [vmem:[%s871_s4 + $0x10] sm:$0xff] %v589_v28  }
 0x1e3   :  { %v713_v29 = vpop.f32.mrb[8].mxu1 }
 0x1e4   :  { %v404_v30 = vpop.f32.mrb[9].mxu1 }
 0x1e5   :  { %v714_v31 = vpop.f32.mrb[10].mxu1 }
 0x1e6   :  { %v604_v32 = vpack.c.bf16 %v714_v31, %v713_v29  ;;  %v407_v33 = vpop.f32.mrb[11].mxu1 }
 0x1e7   :  { %v599_v34 = vpack.c.bf16 %v407_v33, %v404_v30 }
 0x1e8   :  { %620 = vst [vmem:[%s871_s4 + $0x28] sm:$0xff] %v604_v32  }
 0x1e9   :  { %619 = vst [vmem:[%s871_s4 + $0x20] sm:$0xff] %v599_v34  }
 0x1eb   :  { %v717_v35 = vpop.f32.mrb[12].mxu1 }
 0x1ec   :  { %v420_v36 = vpop.f32.mrb[13].mxu1 }
 0x1ed   :  { %v718_v37 = vpop.f32.mrb[14].mxu1 }
 0x1ee   :  { %v614_v38 = vpack.c.bf16 %v718_v37, %v717_v35  ;;  %v423_v39 = vpop.f32.mrb[15].mxu1 }
 0x1ef   :  { %v609_v40 = vpack.c.bf16 %v423_v39, %v420_v36 }
 0x1f0   :  { %622 = vst [vmem:[%s871_s4 + $0x38] sm:$0xff] %v614_v38  }
 0x1f1   :  { %621 = vst [vmem:[%s871_s4 + $0x30] sm:$0xff] %v609_v40  }

// kernel: net_forward.5
= control target key start
LH: loop header
LB: loop body
LE: loop exit
PB: predicated region body
PF: predicated region fallthrough
CT: control target
= control target key end

     0   :  { %v247_v16 = vlaneseq  ;;  %s841_s1 = inlined_call_operand.vmem [shape: bf16[128,128], index: 1, kind: input, shape index: {}]   ;;  %s842_s0 = inlined_call_operand.vmem [shape: bf16[128,128], index: 0, kind: input, shape index: {}]   ;;  %s843_s2 = inlined_call_operand.vmem [shape: f32[1,128], index: 2, kind: input, shape index: {}]   ;;  %s844_s3 = inlined_call_operand.vmem [shape: f32[128,128], index: 3, kind: output, shape index: {}]  }
   0x1   :  { %v527_v0 = vld [vmem:[%s841_s1] sm:$0xff]   ;;  %v528_v1 = vld [vmem:[%s841_s1 + $0x8] sm:$0xff]   ;;  %v529_v2 = vld [vmem:[%s841_s1 + $0x10] sm:$0xff]  }
   0x2   :  { %479 = vmatprep.subr.bf16.mxu0 %v527_v0  ;;  %511 = vmatprep.subr.bf16.mxu1 %v527_v0  ;;  %v530_v3 = vld [vmem:[%s841_s1 + $0x18] sm:$0xff]   ;;  %v535_v4 = vld [vmem:[%s842_s0] sm:$0xff]   ;;  %v532_v7 = vld [vmem:[%s841_s1 + $0x28] sm:$0xff]   ;;  %v675_v17 = vand.u32 127, %v247_v16 }
   0x3   :  { %480 = vmatpush3.bf16.msra.mxu0 %v527_v0  ;;  %519 = vmatpush3.bf16.msra.mxu1 %v527_v0  ;;  %v536_v5 = vld [vmem:[%s842_s0 + $0x20] sm:$0xff]   ;;  %v533_v8 = vld [vmem:[%s841_s1 + $0x30] sm:$0xff]   ;;  %v534_v9 = vld [vmem:[%s841_s1 + $0x38] sm:$0xff]  }
   0x4   :  { %481 = vmatprep.subr.bf16.mxu0 %v528_v1  ;;  %512 = vmatprep.subr.bf16.mxu1 %v528_v1  ;;  %v531_v6 = vld [vmem:[%s841_s1 + $0x20] sm:$0xff]   ;;  %v537_v10 = vld [vmem:[%s842_s0 + $0x8] sm:$0xff]   ;;  %v539_v12 = vld [vmem:[%s842_s0 + $0x10] sm:$0xff]   ;;  %vm249_vm0 = vcmp.lt.s32.totalorder %v675_v17, 8 }
   0x5   :  { %495 = vmatprep.mubr.bf16.mxu0 %v535_v4  ;;  %503 = vmatprep.mubr.bf16.mxu1 %v536_v5  ;;  %v538_v11 = vld [vmem:[%s842_s0 + $0x28] sm:$0xff]   ;;  %v541_v13 = vld [vmem:[%s842_s0 + $0x30] sm:$0xff]   ;;  %v540_v14 = vld [vmem:[%s842_s0 + $0x18] sm:$0xff]  }
   0x6   :  { %v542_v15 = vld [vmem:[%s842_s0 + $0x38] sm:$0xff]   ;;  %v446_v18 = vld [vmem:[%s843_s2] ss:$0 sm:$0xff] }
   0x7   :  { %482 = vmatpush3.bf16.msra.mxu0 %v528_v1  ;;  %520 = vmatpush3.bf16.msra.mxu1 %v528_v1 }
   0x8   :  { %483 = vmatprep.subr.bf16.mxu0 %v529_v2  ;;  %513 = vmatprep.subr.bf16.mxu1 %v529_v2 }
   0xb   :  { %484 = vmatpush3.bf16.msra.mxu0 %v529_v2  ;;  %521 = vmatpush3.bf16.msra.mxu1 %v529_v2 }
   0xc   :  { %485 = vmatprep.subr.bf16.mxu0 %v530_v3  ;;  %514 = vmatprep.subr.bf16.mxu1 %v530_v3 }
   0xf   :  { %486 = vmatpush3.bf16.msra.mxu0 %v530_v3  ;;  %522 = vmatpush3.bf16.msra.mxu1 %v530_v3 }
  0x10   :  { %487 = vmatprep.subr.bf16.mxu0 %v531_v6  ;;  %515 = vmatprep.subr.bf16.mxu1 %v531_v6 }
  0x13   :  { %488 = vmatpush3.bf16.msra.mxu0 %v531_v6  ;;  %523 = vmatpush3.bf16.msra.mxu1 %v531_v6 }
  0x14   :  { %489 = vmatprep.subr.bf16.mxu0 %v532_v7  ;;  %516 = vmatprep.subr.bf16.mxu1 %v532_v7 }
  0x17   :  { %490 = vmatpush3.bf16.msra.mxu0 %v532_v7  ;;  %524 = vmatpush3.bf16.msra.mxu1 %v532_v7 }
  0x18   :  { %491 = vmatprep.subr.bf16.mxu0 %v533_v8  ;;  %517 = vmatprep.subr.bf16.mxu1 %v533_v8 }
  0x1b   :  { %492 = vmatpush3.bf16.msra.mxu0 %v533_v8  ;;  %525 = vmatpush3.bf16.msra.mxu1 %v533_v8 }
  0x1c   :  { %493 = vmatprep.subr.bf16.mxu0 %v534_v9  ;;  %518 = vmatprep.subr.bf16.mxu1 %v534_v9 }
  0x1f   :  { %494 = vmatpush3.bf16.msra.mxu0 %v534_v9  ;;  %526 = vmatpush3.bf16.msra.mxu1 %v534_v9 }
  0x22   :  { %496 = vmatmul.mubr.bf16.vlgmr.msra.gmra.mrb[0].mxu0 %v537_v10  ;;  %504 = vmatmul.mubr.bf16.vlgmr.msra.gmra.mrb[0].mxu1 %v538_v11 }
  0x23   :  { %499 = vmatprep.mubr.bf16.mxu0 %v539_v12  ;;  %507 = vmatprep.mubr.bf16.mxu1 %v541_v13 }
  0x2a   :  { %500 = vmatmul.mubr.bf16.gmra.mrb[4].mxu0 %v540_v14  ;;  %508 = vmatmul.mubr.bf16.gmra.mrb[4].mxu1 %v542_v15 }
  0xf5   :  { %v497_v19 = vpop.f32.mrb[0].mxu0  ;;  %v505_v20 = vpop.f32.mrb[0].mxu1 }
  0xf6   :  { %v193_v21 = vadd.f32 %v497_v19, %v446_v18  ;;  %v225_v22 = vadd.f32 %v505_v20, %v446_v18  ;;  %v184_v23 = vpop.f32.mrb[1].mxu0  ;;  %v216_v24 = vpop.f32.mrb[1].mxu1 }
  0xf7   :  { %v498_v25 = vpop.f32.mrb[2].mxu0  ;;  %v506_v26 = vpop.f32.mrb[2].mxu1  ;;  %v185_v27 = vadd.f32 %v446_v18, %v184_v23  ;;  %v217_v33 = vadd.f32 %v446_v18, %v216_v24 }
  0xf8   :  { %v196_v28 = vadd.f32 %v498_v25, %v446_v18  ;;  %v187_v29 = vpop.f32.mrb[3].mxu0  ;;  %v219_v30 = vpop.f32.mrb[3].mxu1  ;;  %v260_v31 = vsel %vm249_vm0, %v225_v22, -1e+30  ;;  %v252_v32 = vsel %vm249_vm0, %v193_v21, -1e+30  ;;  %v228_v34 = vadd.f32 %v506_v26, %v446_v18 }
  0xf9   :  { %286 = vmax.xlane.f32.xlu0 %v260_v31  ;;  %270 = vmax.xlane.f32.xlu1 %v252_v32  ;;  %v250_v36 = vsel %vm249_vm0, %v185_v27, -1e+30  ;;  %v188_v43 = vadd.f32 %v446_v18, %v187_v29  ;;  %v220_v44 = vadd.f32 %v446_v18, %v219_v30  ;;  %v258_v46 = vsel %vm249_vm0, %v217_v33, -1e+30 }
  0xfa   :  { %v253_v35 = vsel %vm249_vm0, %v196_v28, -1e+30  ;;  %v261_v45 = vsel %vm249_vm0, %v228_v34, -1e+30 }
  0xfb   :  { %v259_v51 = vsel %vm249_vm0, %v220_v44, -1e+30  ;;  %v251_v52 = vsel %vm249_vm0, %v188_v43, -1e+30 }
  0xfd   :  { %272 = vmax.xlane.f32.xlu1 %v253_v35  ;;  %266 = vmax.xlane.f32.xlu0 %v250_v36  ;;  %v501_v37 = vpop.f32.mrb[4].mxu0  ;;  %v509_v38 = vpop.f32.mrb[4].mxu1 }
  0xfe   :  { %v200_v39 = vpop.f32.mrb[5].mxu0  ;;  %v232_v40 = vpop.f32.mrb[5].mxu1  ;;  %v209_v49 = vadd.f32 %v501_v37, %v446_v18  ;;  %v241_v63 = vadd.f32 %v509_v38, %v446_v18 }
  0xff   :  { %v502_v41 = vpop.f32.mrb[6].mxu0  ;;  %v510_v42 = vpop.f32.mrb[6].mxu1  ;;  %v201_v55 = vadd.f32 %v446_v18, %v200_v39  ;;  %v233_v57 = vadd.f32 %v446_v18, %v232_v40 }
 0x100   :  { %v203_v47 = vpop.f32.mrb[7].mxu0  ;;  %v235_v48 = vpop.f32.mrb[7].mxu1  ;;  %v212_v50 = vadd.f32 %v502_v41, %v446_v18  ;;  %v256_v54 = vsel %vm249_vm0, %v209_v49, -1e+30  ;;  %v244_v0 = vadd.f32 %v510_v42, %v446_v18  ;;  %v721_v2 = vsel %vm249_vm0, %v241_v63, -1e+30 }
 0x101   :  { %288 = vmax.xlane.f32.xlu1 %v261_v45  ;;  %282 = vmax.xlane.f32.xlu0 %v258_v46  ;;  %v204_v56 = vadd.f32 %v446_v18, %v203_v47  ;;  %v236_v58 = vadd.f32 %v446_v18, %v235_v48  ;;  %v254_v60 = vsel %vm249_vm0, %v201_v55, -1e+30  ;;  %v711_v62 = vsel %vm249_vm0, %v233_v57, -1e+30 }
 0x102   :  { %v257_v53 = vsel %vm249_vm0, %v212_v50, -1e+30  ;;  %v717_v1 = vsel %vm249_vm0, %v244_v0, -1e+30 }
 0x103   :  { %v255_v59 = vsel %vm249_vm0, %v204_v56, -1e+30  ;;  %v707_v61 = vsel %vm249_vm0, %v236_v58, -1e+30 }
 0x105   :  { %284 = vmax.xlane.f32.xlu1 %v259_v51  ;;  %268 = vmax.xlane.f32.xlu0 %v251_v52 }
 0x109   :  { %280 = vmax.xlane.f32.xlu1 %v257_v53  ;;  %278 = vmax.xlane.f32.xlu0 %v256_v54 }
 0x10d   :  { %276 = vmax.xlane.f32.xlu1 %v255_v59  ;;  %274 = vmax.xlane.f32.xlu0 %v254_v60 }
 0x111   :  { %292 = vmax.xlane.f32.xlu1 %v707_v61  ;;  %290 = vmax.xlane.f32.xlu0 %v711_v62 }
 0x115   :  { %296 = vmax.xlane.f32.xlu1 %v717_v1  ;;  %294 = vmax.xlane.f32.xlu0 %v721_v2 }
 0x186   :  { %v287_v3 = vpop.xlane.xlu0 %286  ;;  %v271_v4 = vpop.xlane.xlu1 %270 }
 0x187   :  { %v725_v5 = vsub.f32 %v252_v32, %v271_v4  ;;  %v727_v6 = vsub.f32 %v260_v31, %v287_v3 }
 0x189   :  { %v318_v7 = vmul.f32 1.442695, %v725_v5  ;;  %v334_v11 = vmul.f32 1.442695, %v727_v6 }
 0x18a   :  { %v273_v8 = vpop.xlane.xlu1 %272  ;;  %v267_v9 = vpop.xlane.xlu0 %266 }
 0x18b   :  { %v730_v10 = vsub.f32 %v253_v35, %v273_v8  ;;  %543 = vpow2.f32 %v318_v7  ;;  %v733_v12 = vsub.f32 %v250_v36, %v267_v9 }
 0x18d   :  { %v320_v13 = vmul.f32 1.442695, %v730_v10  ;;  %v314_v18 = vmul.f32 1.442695, %v733_v12 }
 0x18e   :  { %v289_v14 = vpop.xlane.xlu1 %288  ;;  %v283_v15 = vpop.xlane.xlu0 %282 }
 0x18f   :  { %545 = vpow2.f32 %v320_v13  ;;  %v736_v16 = vsub.f32 %v261_v45, %v289_v14  ;;  %v738_v17 = vsub.f32 %v258_v46, %v283_v15 }
 0x190   :  { %547 = vpow2.f32 %v334_v11 }
 0x191   :  { %v336_v19 = vmul.f32 1.442695, %v736_v16  ;;  %v330_v22 = vmul.f32 1.442695, %v738_v17 }
 0x192   :  { %v285_v20 = vpop.xlane.xlu1 %284  ;;  %v269_v21 = vpop.xlane.xlu0 %268 }
 0x193   :  { %549 = vpow2.f32 %v336_v19  ;;  %v743_v23 = vsub.f32 %v259_v51, %v285_v20  ;;  %v745_v24 = vsub.f32 %v251_v52, %v269_v21 }
 0x194   :  { %551 = vpow2.f32 %v314_v18 }
 0x195   :  { %v316_v25 = vmul.f32 1.442695, %v745_v24  ;;  %v544_v26 = vpop.eup %543  ;;  %553 = vpow2.f32 %v330_v22  ;;  %v332_v29 = vmul.f32 1.442695, %v743_v23 }
 0x196   :  { %v281_v27 = vpop.xlane.xlu1 %280  ;;  %v279_v28 = vpop.xlane.xlu0 %278  ;;  %350 = vadd.xlane.f32.xlu0 %v544_v26 }
 0x197   :  { %v749_v30 = vsub.f32 %v257_v53, %v281_v27  ;;  %v751_v31 = vsub.f32 %v256_v54, %v279_v28  ;;  %555 = vpow2.f32 %v316_v25 }
 0x198   :  { %557 = vpow2.f32 %v332_v29 }
 0x199   :  { %v546_v32 = vpop.eup %545  ;;  %v326_v33 = vmul.f32 1.442695, %v751_v31  ;;  %v328_v37 = vmul.f32 1.442695, %v749_v30 }
 0x19a   :  { %v548_v34 = vpop.eup %547  ;;  %352 = vadd.xlane.f32.xlu1 %v546_v32  ;;  %v277_v35 = vpop.xlane.xlu1 %276 }
 0x19b   :  { %v275_v36 = vpop.xlane.xlu0 %274  ;;  %v755_v38 = vsub.f32 %v255_v59, %v277_v35  ;;  %366 = vadd.xlane.f32.xlu0 %v548_v34  ;;  %559 = vpow2.f32 %v326_v33 }
 0x19c   :  { %v757_v39 = vsub.f32 %v254_v60, %v275_v36  ;;  %561 = vpow2.f32 %v328_v37 }
 0x19d   :  { %v550_v40 = vpop.eup %549  ;;  %v324_v45 = vmul.f32 1.442695, %v755_v38 }
 0x19e   :  { %v322_v41 = vmul.f32 1.442695, %v757_v39  ;;  %v552_v42 = vpop.eup %551  ;;  %368 = vadd.xlane.f32.xlu1 %v550_v40  ;;  %v293_v43 = vpop.xlane.xlu1 %292 }
 0x19f   :  { %v291_v44 = vpop.xlane.xlu0 %290  ;;  %v762_v46 = vsub.f32 %v707_v61, %v293_v43  ;;  %346 = vadd.xlane.f32.xlu0 %v552_v42  ;;  %v554_v48 = vpop.eup %553 }
 0x1a0   :  { %v765_v47 = vsub.f32 %v711_v62, %v291_v44  ;;  %563 = vpow2.f32 %v322_v41 }
 0x1a1   :  { %v556_v50 = vpop.eup %555  ;;  %565 = vpow2.f32 %v324_v45  ;;  %v340_v53 = vmul.f32 1.442695, %v762_v46 }
 0x1a2   :  { %v338_v49 = vmul.f32 1.442695, %v765_v47  ;;  %v297_v51 = vpop.xlane.xlu1 %296  ;;  %348 = vadd.xlane.f32.xlu1 %v556_v50  ;;  %v558_v56 = vpop.eup %557 }
 0x1a3   :  { %v295_v52 = vpop.xlane.xlu0 %294  ;;  %362 = vadd.xlane.f32.xlu0 %v554_v48  ;;  %v773_v55 = vsub.f32 %v717_v1, %v297_v51 }
 0x1a4   :  { %v770_v54 = vsub.f32 %v721_v2, %v295_v52  ;;  %567 = vpow2.f32 %v338_v49 }
 0x1a5   :  { %v560_v58 = vpop.eup %559  ;;  %569 = vpow2.f32 %v340_v53  ;;  %v344_v59 = vmul.f32 1.442695, %v773_v55 }
 0x1a6   :  { %v342_v57 = vmul.f32 1.442695, %v770_v54  ;;  %364 = vadd.xlane.f32.xlu1 %v558_v56  ;;  %v562_v60 = vpop.eup %561 }
 0x1a7   :  { %358 = vadd.xlane.f32.xlu0 %v560_v58 }
 0x1a8   :  { %571 = vpow2.f32 %v342_v57 }
 0x1a9   :  { %573 = vpow2.f32 %v344_v59 }
 0x1aa   :  { %v564_v61 = vpop.eup %563  ;;  %360 = vadd.xlane.f32.xlu1 %v562_v60 }
 0x1ab   :  { %354 = vadd.xlane.f32.xlu0 %v564_v61  ;;  %v566_v62 = vpop.eup %565 }
 0x1ae   :  { %v568_v63 = vpop.eup %567  ;;  %356 = vadd.xlane.f32.xlu1 %v566_v62 }
 0x1af   :  { %370 = vadd.xlane.f32.xlu0 %v568_v63  ;;  %v570_v0 = vpop.eup %569 }
 0x1b2   :  { %v572_v1 = vpop.eup %571  ;;  %372 = vadd.xlane.f32.xlu1 %v570_v0 }
 0x1b3   :  { %374 = vadd.xlane.f32.xlu0 %v572_v1  ;;  %v574_v2 = vpop.eup %573 }
 0x1b6   :  { %376 = vadd.xlane.f32.xlu1 %v574_v2 }
 0x223   :  { %v351_v3 = vpop.xlane.xlu0 %350 }
 0x224   :  { %575 = vlog2.f32 %v351_v3 }
 0x227   :  { %v353_v4 = vpop.xlane.xlu1 %352 }
 0x228   :  { %577 = vlog2.f32 %v353_v4  ;;  %v367_v7 = vpop.xlane.xlu0 %366 }
 0x229   :  { %579 = vlog2.f32 %v367_v7 }
 0x22b   :  { %v369_v8 = vpop.xlane.xlu1 %368 }
 0x22c   :  { %581 = vlog2.f32 %v369_v8  ;;  %v347_v9 = vpop.xlane.xlu0 %346 }
 0x22d   :  { %583 = vlog2.f32 %v347_v9 }
 0x22e   :  { %v576_v11 = vpop.eup %575 }
 0x22f   :  { %v383_v13 = vmul.f32 0.6931472, %v576_v11  ;;  %v349_v14 = vpop.xlane.xlu1 %348 }
 0x230   :  { %v363_v15 = vpop.xlane.xlu0 %362  ;;  %585 = vlog2.f32 %v349_v14 }
 0x231   :  { %v412_v19 = vsub.f32 %v725_v5, %v383_v13  ;;  %587 = vlog2.f32 %v363_v15 }
 0x232   :  { %v578_v18 = vpop.eup %577 }
 0x233   :  { %v580_v20 = vpop.eup %579  ;;  %v385_v21 = vmul.f32 0.6931472, %v578_v18  ;;  %428 = vst [vmem:[%s844_s3 + $0x10] sm:$0xff] %v412_v19  ;;  %v365_v25 = vpop.xlane.xlu1 %364 }
 0x234   :  { %v399_v22 = vmul.f32 0.6931472, %v580_v20  ;;  %v359_v26 = vpop.xlane.xlu0 %358  ;;  %589 = vlog2.f32 %v365_v25 }
 0x235   :  { %v413_v27 = vsub.f32 %v730_v10, %v385_v21  ;;  %591 = vlog2.f32 %v359_v26 }
 0x236   :  { %v582_v28 = vpop.eup %581  ;;  %v420_v29 = vsub.f32 %v727_v6, %v399_v22 }
 0x237   :  { %v584_v32 = vpop.eup %583  ;;  %429 = vst [vmem:[%s844_s3 + $0x18] sm:$0xff] %v413_v27  ;;  %v401_v5 = vmul.f32 0.6931472, %v582_v28  ;;  %v361_v34 = vpop.xlane.xlu1 %360 }
 0x238   :  { %436 = vst [vmem:[%s844_s3 + $0x50] sm:$0xff] %v420_v29  ;;  %v379_v33 = vmul.f32 0.6931472, %v584_v32  ;;  %v355_v35 = vpop.xlane.xlu0 %354  ;;  %593 = vlog2.f32 %v361_v34 }
 0x239   :  { %v421_v10 = vsub.f32 %v736_v16, %v401_v5  ;;  %595 = vlog2.f32 %v355_v35 }
 0x23a   :  { %v410_v36 = vsub.f32 %v733_v12, %v379_v33  ;;  %v586_v6 = vpop.eup %585 }
 0x23b   :  { %437 = vst [vmem:[%s844_s3 + $0x58] sm:$0xff] %v421_v10  ;;  %v588_v37 = vpop.eup %587  ;;  %v381_v40 = vmul.f32 0.6931472, %v586_v6  ;;  %v357_v41 = vpop.xlane.xlu1 %356 }
 0x23c   :  { %426 = vst [vmem:[%s844_s3] sm:$0xff] %v410_v36  ;;  %v371_v42 = vpop.xlane.xlu0 %370  ;;  %v395_v43 = vmul.f32 0.6931472, %v588_v37  ;;  %597 = vlog2.f32 %v357_v41 }
 0x23d   :  { %v411_v16 = vsub.f32 %v745_v24, %v381_v40  ;;  %599 = vlog2.f32 %v371_v42 }
 0x23e   :  { %v590_v12 = vpop.eup %589  ;;  %v418_v44 = vsub.f32 %v738_v17, %v395_v43 }
 0x23f   :  { %v592_v45 = vpop.eup %591  ;;  %427 = vst [vmem:[%s844_s3 + $0x8] sm:$0xff] %v411_v16  ;;  %v397_v48 = vmul.f32 0.6931472, %v590_v12  ;;  %v373_v49 = vpop.xlane.xlu1 %372 }
 0x240   :  { %v375_v50 = vpop.xlane.xlu0 %374  ;;  %434 = vst [vmem:[%s844_s3 + $0x40] sm:$0xff] %v418_v44  ;;  %v391_v51 = vmul.f32 0.6931472, %v592_v45  ;;  %601 = vlog2.f32 %v373_v49 }
 0x241   :  { %v419_v24 = vsub.f32 %v743_v23, %v397_v48  ;;  %603 = vlog2.f32 %v375_v50 }
 0x242   :  { %v594_v52 = vpop.eup %593  ;;  %v416_v17 = vsub.f32 %v751_v31, %v391_v51 }
 0x243   :  { %v596_v53 = vpop.eup %595  ;;  %435 = vst [vmem:[%s844_s3 + $0x48] sm:$0xff] %v419_v24  ;;  %v393_v56 = vmul.f32 0.6931472, %v594_v52  ;;  %v377_v57 = vpop.xlane.xlu1 %376 }
 0x244   :  { %432 = vst [vmem:[%s844_s3 + $0x30] sm:$0xff] %v416_v17  ;;  %v387_v58 = vmul.f32 0.6931472, %v596_v53  ;;  %605 = vlog2.f32 %v377_v57 }
 0x245   :  { %v417_v59 = vsub.f32 %v749_v30, %v393_v56 }
 0x246   :  { %v598_v23 = vpop.eup %597  ;;  %v414_v60 = vsub.f32 %v757_v39, %v387_v58 }
 0x247   :  { %v600_v61 = vpop.eup %599  ;;  %433 = vst [vmem:[%s844_s3 + $0x38] sm:$0xff] %v417_v59  ;;  %v389_v31 = vmul.f32 0.6931472, %v598_v23 }
 0x248   :  { %430 = vst [vmem:[%s844_s3 + $0x20] sm:$0xff] %v414_v60  ;;  %v403_v62 = vmul.f32 0.6931472, %v600_v61 }
 0x249   :  { %v415_v63 = vsub.f32 %v755_v38, %v389_v31 }
 0x24a   :  { %v602_v0 = vpop.eup %601  ;;  %v422_v1 = vsub.f32 %v765_v47, %v403_v62 }
 0x24b   :  { %v604_v30 = vpop.eup %603  ;;  %431 = vst [vmem:[%s844_s3 + $0x28] sm:$0xff] %v415_v63  ;;  %v405_v39 = vmul.f32 0.6931472, %v602_v0 }
 0x24c   :  { %438 = vst [vmem:[%s844_s3 + $0x60] sm:$0xff] %v422_v1  ;;  %v407_v2 = vmul.f32 0.6931472, %v604_v30 }
 0x24d   :  { %v423_v3 = vsub.f32 %v762_v46, %v405_v39 }
 0x24e   :  { %v606_v4 = vpop.eup %605  ;;  %v424_v7 = vsub.f32 %v770_v54, %v407_v2 }
 0x24f   :  { %439 = vst [vmem:[%s844_s3 + $0x68] sm:$0xff] %v423_v3  ;;  %v409_v38 = vmul.f32 0.6931472, %v606_v4 }
 0x250   :  { %440 = vst [vmem:[%s844_s3 + $0x70] sm:$0xff] %v424_v7 }
 0x251   :  { %v425_v47 = vsub.f32 %v773_v55, %v409_v38 }
 0x253   :  { %441 = vst [vmem:[%s844_s3 + $0x78] sm:$0xff] %v425_v47 }

</bundles_post_ra>
